<compile_context>
chip_gen: v7x
topology: tpu7x:2x2x1
jax: 0.10.0
libtpu: 0.0.40
codegen_flags: <defaults>
</compile_context>

<pallas_src>
import functools

import jax
import jax.numpy as jnp
from jax import lax
from jax.experimental import pallas as pl
from jax.experimental.pallas import tpu as pltpu


def _mlp_kernel(x_ref,
                w1_ref, b1_ref,
                w2_ref, b2_ref,
                w3_ref, b3_ref,
                w4_ref, b4_ref,
                o_ref):
    # x_ref: (block_b, F) — native input layout.  weights: (out, in);
    # biases: (out, 1).  All activations are (hidden, block_b): batch on lanes.
    x = x_ref[...]

    # Layer 1: contract W1's "in" axis with x's feature axis -> (32, block_b).
    h = lax.dot_general(w1_ref[...], x,
                        dimension_numbers=(((1,), (1,)), ((), ())),
                        preferred_element_type=jnp.float32) + b1_ref[...]
    h = jnp.maximum(h, 0.0)

    h = jnp.dot(w2_ref[...], h, preferred_element_type=jnp.float32) + b2_ref[...]
    h = jnp.maximum(h, 0.0)

    h = jnp.dot(w3_ref[...], h, preferred_element_type=jnp.float32) + b3_ref[...]
    h = jnp.maximum(h, 0.0)

    h = jnp.dot(w4_ref[...], h, preferred_element_type=jnp.float32) + b4_ref[...]

    o_ref[...] = h.astype(o_ref.dtype)


@functools.partial(jax.jit, static_argnames=("block_b",))
def xynet_forward(x, params, block_b=8192):
    """x: [B, feature_size] float32 (or bf16). params: w1..w4 (out,in), b1..b4 (out,)."""
    B, F = x.shape
    out_size = params["w4"].shape[0]

    # Batch (lane) tile selection:
    #  * tiles are multiples of 128 when tiling (legal blocks, lane-dense
    #    unmasked output stores),
    #  * large batches that fit one requested tile are still split in two so
    #    the grid has >=2 steps and can span both TensorCores on v7x,
    #  * block == full dims is always legal, so tiny batches use one tile.
    if B <= block_b:
        if B > 512:
            block_b = max(128, (pl.cdiv(B, 2) // 128) * 128)
        else:
            block_b = B
    else:
        block_b = max(128, (block_b // 128) * 128)

    w1, w2, w3, w4 = params["w1"], params["w2"], params["w3"], params["w4"]
    b1 = params["b1"][:, None]
    b2 = params["b2"][:, None]
    b3 = params["b3"][:, None]
    b4 = params["b4"][:, None]

    grid = (pl.cdiv(B, block_b),)

    def resident(arr):
        # Grid-invariant operand: full array, same block every step (VMEM-resident).
        return pl.BlockSpec(arr.shape, lambda i: (0, 0))

    out_t = pl.pallas_call(
        _mlp_kernel,
        out_shape=jax.ShapeDtypeStruct((out_size, B), x.dtype),
        grid_spec=pltpu.PrefetchScalarGridSpec(
            num_scalar_prefetch=0,
            grid=grid,
            in_specs=[
                pl.BlockSpec((block_b, F), lambda i: (i, 0)),   # native [B,F] layout
                resident(w1), resident(b1),
                resident(w2), resident(b2),
                resident(w3), resident(b3),
                resident(w4), resident(b4),
            ],
            out_specs=pl.BlockSpec((out_size, block_b), lambda i: (0, i)),
        ),
        compiler_params=pltpu.CompilerParams(
            dimension_semantics=("parallel",)),   # batch tiles shard across TCs on v7x
    )(x, w1, b1, w2, b2, w3, b3, w4, b4)

    # Small wrapper transpose to keep the PyTorch [B, out] interface.
    # Callers that can consume [out, B] should take `out_t` directly.
    return out_t.T


def init_params(key, feature_size, output_size):
    """Deterministic synthetic init matching nn.Linear shapes (out, in)."""
    dims = [(feature_size, 32), (32, 16), (16, 8), (8, output_size)]
    params = {}
    for idx, (fan_in, fan_out) in enumerate(dims, start=1):
        key, kw, kb = jax.random.split(key, 3)
        bound = 1.0 / jnp.sqrt(fan_in)
        params[f"w{idx}"] = jax.random.uniform(
            kw, (fan_out, fan_in), jnp.float32, -bound, bound)
        params[f"b{idx}"] = jax.random.uniform(
            kb, (fan_out,), jnp.float32, -bound, bound)
    return params


def _reference(x, params):
    h = x
    for idx in range(1, 5):
        h = h @ params[f"w{idx}"].T + params[f"b{idx}"]
        if idx < 4:
            h = jnp.maximum(h, 0.0)
    return h


if __name__ == "__main__":
    feature_size = 16
    output_size = 4

    key = jax.random.PRNGKey(0)
    key, kp = jax.random.split(key)
    params = init_params(kp, feature_size, output_size)

    # Case 1: multi-step grid (two 128-wide batch tiles) — exercises the
    # parallel batch axis / megacore path and the native-layout input spec.
    key, kx = jax.random.split(key)
    x = jax.random.normal(kx, (256, feature_size), jnp.float32)
    out = jax.block_until_ready(xynet_forward(x, params, block_b=128))
    ref = _reference(x, params)
    assert out.shape == (256, output_size)
    assert jnp.allclose(out, ref, atol=1e-5, rtol=1e-5), "mismatch vs reference (even batch)"

    # Case 2: ragged batch — last tile has padded batch rows/lanes; padded
    # output lanes are masked on writeback, so valid rows must match exactly.
    key, kx2 = jax.random.split(key)
    x2 = jax.random.normal(kx2, (200, feature_size), jnp.float32)
    out2 = jax.block_until_ready(xynet_forward(x2, params, block_b=128))
    ref2 = _reference(x2, params)
    assert out2.shape == (200, output_size)
    assert jnp.allclose(out2, ref2, atol=1e-5, rtol=1e-5), "mismatch vs reference (ragged batch)"

    # Case 3: single-tile small batch (block == full dims path).
    key, kx3 = jax.random.split(key)
    x3 = jax.random.normal(kx3, (64, feature_size), jnp.float32)
    out3 = jax.block_until_ready(xynet_forward(x3, params))
    ref3 = _reference(x3, params)
    assert jnp.allclose(out3, ref3, atol=1e-5, rtol=1e-5), "mismatch vs reference (small batch)"

    print("KERNEL_OK")
</pallas_src>

<mosaic_0001>
module attributes {stable_mosaic.version = 11 : i64} {
  func.func @_mlp_kernel(%arg0: i32, %arg1: memref<128x16xf32, #tpu.memory_space<vmem>>, %arg2: memref<32x16xf32, #tpu.memory_space<vmem>>, %arg3: memref<32x1xf32, #tpu.memory_space<vmem>>, %arg4: memref<16x32xf32, #tpu.memory_space<vmem>>, %arg5: memref<16x1xf32, #tpu.memory_space<vmem>>, %arg6: memref<8x16xf32, #tpu.memory_space<vmem>>, %arg7: memref<8x1xf32, #tpu.memory_space<vmem>>, %arg8: memref<4x8xf32, #tpu.memory_space<vmem>>, %arg9: memref<4x1xf32, #tpu.memory_space<vmem>>, %arg10: memref<4x128xf32, #tpu.memory_space<vmem>>) attributes {dimension_semantics = [#tpu.dimension_semantics<parallel>], iteration_bounds = array<i64: 2>, scalar_prefetch = 0 : i64, scratch_operands = 0 : i64, tpu.core_type = #tpu.core_type<tc>, window_params = [{transform_indices = @transform_0, window_bounds = array<i64: 128, 16>}, {pipeline_mode = #tpu.pipeline_mode<synchronous>, transform_indices = @transform_1, window_bounds = array<i64: 32, 16>}, {pipeline_mode = #tpu.pipeline_mode<synchronous>, transform_indices = @transform_2, window_bounds = array<i64: 32, 1>}, {pipeline_mode = #tpu.pipeline_mode<synchronous>, transform_indices = @transform_3, window_bounds = array<i64: 16, 32>}, {pipeline_mode = #tpu.pipeline_mode<synchronous>, transform_indices = @transform_4, window_bounds = array<i64: 16, 1>}, {pipeline_mode = #tpu.pipeline_mode<synchronous>, transform_indices = @transform_5, window_bounds = array<i64: 8, 16>}, {pipeline_mode = #tpu.pipeline_mode<synchronous>, transform_indices = @transform_6, window_bounds = array<i64: 8, 1>}, {pipeline_mode = #tpu.pipeline_mode<synchronous>, transform_indices = @transform_7, window_bounds = array<i64: 4, 8>}, {pipeline_mode = #tpu.pipeline_mode<synchronous>, transform_indices = @transform_8, window_bounds = array<i64: 4, 1>}, {transform_indices = @transform_9, window_bounds = array<i64: 4, 128>}]} {
    %c0 = arith.constant 0 : index
    %c0_0 = arith.constant 0 : index
    %0 = vector.load %arg1[%c0, %c0_0] : memref<128x16xf32, #tpu.memory_space<vmem>>, vector<128x16xf32>
    %c0_1 = arith.constant 0 : index
    %c0_2 = arith.constant 0 : index
    %1 = vector.load %arg2[%c0_1, %c0_2] : memref<32x16xf32, #tpu.memory_space<vmem>>, vector<32x16xf32>
    %cst = arith.constant dense<0.000000e+00> : vector<32x128xf32>
    %2 = tpu.matmul %1, %0, %cst {dimension_numbers = #tpu.dot_dimension_numbers<[1], [1], [0], [0], [0, 0, 1, 0], [], []>} : vector<32x16xf32>, vector<128x16xf32>, vector<32x128xf32> -> vector<32x128xf32>
    %c0_3 = arith.constant 0 : index
    %c0_4 = arith.constant 0 : index
    %3 = vector.load %arg3[%c0_3, %c0_4] : memref<32x1xf32, #tpu.memory_space<vmem>>, vector<32x1xf32>
    %4 = vector.broadcast %3 : vector<32x1xf32> to vector<32x128xf32>
    %5 = arith.addf %2, %4 : vector<32x128xf32>
    %cst_5 = arith.constant 0.000000e+00 : f32
    %6 = vector.broadcast %cst_5 : f32 to vector<32x128xf32>
    %7 = arith.maximumf %5, %6 : vector<32x128xf32>
    %c0_6 = arith.constant 0 : index
    %c0_7 = arith.constant 0 : index
    %8 = vector.load %arg4[%c0_6, %c0_7] : memref<16x32xf32, #tpu.memory_space<vmem>>, vector<16x32xf32>
    %cst_8 = arith.constant dense<0.000000e+00> : vector<16x128xf32>
    %9 = tpu.matmul %8, %7, %cst_8 {dimension_numbers = #tpu.dot_dimension_numbers<[1], [0], [0], [1], [0, 0, 1, 1], [], []>} : vector<16x32xf32>, vector<32x128xf32>, vector<16x128xf32> -> vector<16x128xf32>
    %c0_9 = arith.constant 0 : index
    %c0_10 = arith.constant 0 : index
    %10 = vector.load %arg5[%c0_9, %c0_10] : memref<16x1xf32, #tpu.memory_space<vmem>>, vector<16x1xf32>
    %11 = vector.broadcast %10 : vector<16x1xf32> to vector<16x128xf32>
    %12 = arith.addf %9, %11 : vector<16x128xf32>
    %cst_11 = arith.constant 0.000000e+00 : f32
    %13 = vector.broadcast %cst_11 : f32 to vector<16x128xf32>
    %14 = arith.maximumf %12, %13 : vector<16x128xf32>
    %c0_12 = arith.constant 0 : index
    %c0_13 = arith.constant 0 : index
    %15 = vector.load %arg6[%c0_12, %c0_13] : memref<8x16xf32, #tpu.memory_space<vmem>>, vector<8x16xf32>
    %cst_14 = arith.constant dense<0.000000e+00> : vector<8x128xf32>
    %16 = tpu.matmul %15, %14, %cst_14 {dimension_numbers = #tpu.dot_dimension_numbers<[1], [0], [0], [1], [0, 0, 1, 1], [], []>} : vector<8x16xf32>, vector<16x128xf32>, vector<8x128xf32> -> vector<8x128xf32>
    %c0_15 = arith.constant 0 : index
    %c0_16 = arith.constant 0 : index
    %17 = vector.load %arg7[%c0_15, %c0_16] : memref<8x1xf32, #tpu.memory_space<vmem>>, vector<8x1xf32>
    %18 = vector.broadcast %17 : vector<8x1xf32> to vector<8x128xf32>
    %19 = arith.addf %16, %18 : vector<8x128xf32>
    %cst_17 = arith.constant 0.000000e+00 : f32
    %20 = vector.broadcast %cst_17 : f32 to vector<8x128xf32>
    %21 = arith.maximumf %19, %20 : vector<8x128xf32>
    %c0_18 = arith.constant 0 : index
    %c0_19 = arith.constant 0 : index
    %22 = vector.load %arg8[%c0_18, %c0_19] : memref<4x8xf32, #tpu.memory_space<vmem>>, vector<4x8xf32>
    %cst_20 = arith.constant dense<0.000000e+00> : vector<4x128xf32>
    %23 = tpu.matmul %22, %21, %cst_20 {dimension_numbers = #tpu.dot_dimension_numbers<[1], [0], [0], [1], [0, 0, 1, 1], [], []>} : vector<4x8xf32>, vector<8x128xf32>, vector<4x128xf32> -> vector<4x128xf32>
    %c0_21 = arith.constant 0 : index
    %c0_22 = arith.constant 0 : index
    %24 = vector.load %arg9[%c0_21, %c0_22] : memref<4x1xf32, #tpu.memory_space<vmem>>, vector<4x1xf32>
    %25 = vector.broadcast %24 : vector<4x1xf32> to vector<4x128xf32>
    %26 = arith.addf %23, %25 : vector<4x128xf32>
    %c0_23 = arith.constant 0 : index
    %c0_24 = arith.constant 0 : index
    %27 = vector.load %arg10[%c0_23, %c0_24] : memref<4x128xf32, #tpu.memory_space<vmem>>, vector<4x128xf32>
    tpu.vector_store %arg10[%c0_23, %c0_24], %26 {strides = array<i32>} : memref<4x128xf32, #tpu.memory_space<vmem>>, vector<4x128xf32>,
    return
  }
  func.func @transform_0(%arg0: i32) -> (i32, i32) {
    %c0_i32 = arith.constant 0 : i32
    %c0_i32_0 = arith.constant 0 : i32
    return %arg0, %c0_i32 : i32, i32
  }
  func.func @transform_1(%arg0: i32) -> (i32, i32) {
    %c0_i32 = arith.constant 0 : i32
    %c0_i32_0 = arith.constant 0 : i32
    %c0_i32_1 = arith.constant 0 : i32
    return %c0_i32, %c0_i32_0 : i32, i32
  }
  func.func @transform_2(%arg0: i32) -> (i32, i32) {
    %c0_i32 = arith.constant 0 : i32
    %c0_i32_0 = arith.constant 0 : i32
    %c0_i32_1 = arith.constant 0 : i32
    return %c0_i32, %c0_i32_0 : i32, i32
  }
  func.func @transform_3(%arg0: i32) -> (i32, i32) {
    %c0_i32 = arith.constant 0 : i32
    %c0_i32_0 = arith.constant 0 : i32
    %c0_i32_1 = arith.constant 0 : i32
    return %c0_i32, %c0_i32_0 : i32, i32
  }
  func.func @transform_4(%arg0: i32) -> (i32, i32) {
    %c0_i32 = arith.constant 0 : i32
    %c0_i32_0 = arith.constant 0 : i32
    %c0_i32_1 = arith.constant 0 : i32
    return %c0_i32, %c0_i32_0 : i32, i32
  }
  func.func @transform_5(%arg0: i32) -> (i32, i32) {
    %c0_i32 = arith.constant 0 : i32
    %c0_i32_0 = arith.constant 0 : i32
    %c0_i32_1 = arith.constant 0 : i32
    return %c0_i32, %c0_i32_0 : i32, i32
  }
  func.func @transform_6(%arg0: i32) -> (i32, i32) {
    %c0_i32 = arith.constant 0 : i32
    %c0_i32_0 = arith.constant 0 : i32
    %c0_i32_1 = arith.constant 0 : i32
    return %c0_i32, %c0_i32_0 : i32, i32
  }
  func.func @transform_7(%arg0: i32) -> (i32, i32) {
    %c0_i32 = arith.constant 0 : i32
    %c0_i32_0 = arith.constant 0 : i32
    %c0_i32_1 = arith.constant 0 : i32
    return %c0_i32, %c0_i32_0 : i32, i32
  }
  func.func @transform_8(%arg0: i32) -> (i32, i32) {
    %c0_i32 = arith.constant 0 : i32
    %c0_i32_0 = arith.constant 0 : i32
    %c0_i32_1 = arith.constant 0 : i32
    return %c0_i32, %c0_i32_0 : i32, i32
  }
  func.func @transform_9(%arg0: i32) -> (i32, i32) {
    %c0_i32 = arith.constant 0 : i32
    %c0_i32_0 = arith.constant 0 : i32
    return %c0_i32, %arg0 : i32, i32
  }
}

</mosaic_0001>

<bundles_post_ra>
// kernel: xynet_forward.1
= control target key start
LH: loop header
LB: loop body
LE: loop exit
PB: predicated region body
PF: predicated region fallthrough
CT: control target
= control target key end

     0   :  { %14 = vsyncpa [#allocation3], 0  ;;  %s1423_s0 = inlined_call_operand.vmem [shape: f32[256,16], index: 0, kind: input, shape index: {}]   ;;  %s1424_s1 = inlined_call_operand.vmem [shape: f32[32,16], index: 1, kind: input, shape index: {}]   ;;  %s1425_s2 = inlined_call_operand.vmem [shape: f32[32,1], index: 2, kind: input, shape index: {}]   ;;  %s1426_s3 = inlined_call_operand.vmem [shape: f32[16,32], index: 3, kind: input, shape index: {}]   ;;  %s1427_s4 = inlined_call_operand.vmem [shape: f32[16,1], index: 4, kind: input, shape index: {}]   ;;  %s1428_s5 = inlined_call_operand.vmem [shape: f32[8,16], index: 5, kind: input, shape index: {}]   ;;  %s1429_s6 = inlined_call_operand.vmem [shape: f32[8,1], index: 6, kind: input, shape index: {}]   ;;  %s1430_s7 = inlined_call_operand.vmem [shape: f32[4,8], index: 7, kind: input, shape index: {}]   ;;  %s1431_s8 = inlined_call_operand.vmem [shape: f32[4,1], index: 8, kind: input, shape index: {}]   ;;  %s1432_s9 = inlined_call_operand.hbm [shape: f32[4,256], index: 9, kind: output, shape index: {}]  }
   0x1   :  { %16 = vsyncpa [#allocation3 + $0x1], 0  ;;  %s1211_s30 = smov 0   ;;  %s1213_s10 = smov 0  }
   0x2   :  { %s1215_s11 = smov 0   ;;  %s1217_s12 = smov 0  }
   0x3 LB: > { %s1232_s13 = sadd.s32 4294967295, %s1154_s12   ;;  %s861_s14 = sadd.s32 4294967294, %s1154_s12   ;;  %s1154_s12 = sphi %s1217_s12, %s1440_s12   ;;  %s1150_s11 = sphi %s1215_s11, %s1439_s11   ;;  %s1146_s10 = sphi %s1213_s10, %s1438_s10   ;;  %s1142_s30 = sphi %s1211_s30, %s1437_s30  }
   0x4   : > { %s1236_s15 = sadd.s32 1, %s1154_s12   ;;  %s223_s16 = sadd.s32 1, %s1150_s11 }
   0x5   : > { %s220_s17 = ssub.s32 %s1154_s12, %s1236_s15  ;;  %p233_p0 = scmp.ne.s32.totalorder %s1150_s11, %s1146_s10 }
   0x6   : > { %p221_p1 = scmp.eq.s32.totalorder %s220_s17, 0  ;;  %p234_p2 = scmp.eq.s32.totalorder %s1232_s13, 1 }
   0x7   : > { %p239_p3 = scmp.ne.s32.totalorder %s1146_s10, %s1142_s30  ;;  %p240_p4 = scmp.eq.s32.totalorder %s861_s14, 1 }
   0x8   : > { %s1247_s18 = scalar_select %p221_p1, %s1150_s11, %s223_s16  }
   0x9   : > { %p1249_p5 = por %p234_p2, %p233_p0  ;;  %p1253_p6 = por %p240_p4, %p239_p3 }
   0xa   : > { %p864_p7 = scmp.ge.s32.totalorder %s1154_s12, 1  ;;  %p291_p8 = scmp.lt.s32.totalorder %s1154_s12, 3 }
   0xc   : > { %p292_p9 = pnand %p864_p7, %p291_p8 }
   0xd   : > { %s866_s21 = sshll.u32 (!%p292_p9), %s1232_s13, 4  ;;  %vm377_vm0 = vcmask (!%p292_p9), 130048   ;;  %v349_v0 = vld [vmem:[%s1424_s1] sm:$0xff] (!%p292_p9)  ;;  %v1156_v1 = vmov (!%p292_p9), 0   ;;  %v355_v3 = vld [vmem:[%s1425_s2 + $0x10] sm:$0xff] (!%p292_p9)  ;;  %v354_v4 = vld [vmem:[%s1425_s2 + $0x8] sm:$0xff] (!%p292_p9) }
   0xe   : > { %295 = sbr.rel (%p292_p9) target bundleno = 985 (0x3d9), region = 56  ;;  %p328_p10 = scmp.lt.s32.totalorder (!%p292_p9), %s866_s21, 31  ;;  %959 = vmatprep.mubr.msk.f32.mxu0 (!%p292_p9), %vm377_vm0, %v349_v0  ;;  %1090 = vset.pattern.permute.xlu0 (!%p292_p9), %v1156_v1  ;;  %v353_v2 = vld [vmem:[%s1425_s2] sm:$0xff] (!%p292_p9)  ;;  %v356_v5 = vld [vmem:[%s1425_s2 + $0x18] sm:$0xff] (!%p292_p9)  ;;  %vm1283_vm1 = vmpackc.low (!%p292_p9), %vm377_vm0, %vm377_vm0  ;;  %vm541_vm2 = vcmask (!%p292_p9), 261120   ;;  %v1157_v58 = vmov (!%p292_p9), 0.0|0.0  }
   0xf   : > { %359 = vperm.xlu0 (!%p292_p9), %1090, %v353_v2   ;;  %1091 = vset.pattern.permute.xlu1 (!%p292_p9), %v1156_v1  ;;  %v529_v7 = vld [vmem:[%s1427_s4] sm:$0xff] (!%p292_p9)  ;;  %v530_v13 = vld [vmem:[%s1427_s4 + $0x8] sm:$0xff] (!%p292_p9)  ;;  %v351_v36 = vld [vmem:[%s1424_s1 + $0x10] sm:$0xff] (!%p292_p9)  ;;  %vm1158_vm3 = vmmov (!%p292_p9), 0   ;;  %v1159_v59 = vmov (!%p292_p9), 0.0   ;;  %vm713_vm4 = vcmask (!%p292_p9), 64512  }
  0x10   : > { %369 = vperm.xlu1 (!%p292_p9), %1091, %v355_v3   ;;  %v626_v15 = vld [vmem:[%s1429_s6] sm:$0xff] (!%p292_p9)  ;;  %v350_v35 = vld [vmem:[%s1424_s1 + $0x8] sm:$0xff] (!%p292_p9)  ;;  %v352_v37 = vld [vmem:[%s1424_s1 + $0x18] sm:$0xff] (!%p292_p9)  ;;  %s324_s23 = sand.u32 (!%p292_p9), 1, %s1146_s10  }
  0x11   : > { %v707_v16 = vld [vmem:[%s1431_s8] sm:$0xf] (!%p292_p9)  ;;  %v528_v57 = vld [vmem:[%s1426_s3 + $0x8] sm:$0xff] (!%p292_p9)  ;;  %s865_s25 = sshll.u32 (!%p292_p9), %s324_s23, 2  ;;  %s789_s14 = scalar_lea.sflag (!%p292_p9), [#allocation3], %s324_s23 }
  0x12   : > { %v527_v38 = vld [vmem:[%s1426_s3] sm:$0xff] (!%p292_p9)  ;;  %s326_s26 = scalar_lea.vmem (!%p292_p9), [#allocation2], %s865_s25 }
  0x13   : > { %364 = vperm.xlu0 (!%p292_p9), %1090, %v354_v4   ;;  %973 = vmatprep.mubr.msk.f32.mxu1 (!%p292_p9), %vm541_vm2, %v527_v38 }
  0x14   : > { %374 = vperm.xlu1 (!%p292_p9), %1091, %v356_v5   ;;  %v625_v5 = vld [vmem:[%s1428_s5] sm:$0xff] (!%p292_p9) }
  0x15   : > { %s1442_s21 = smov (!%p328_p10, %s866_s21), 31 }
  0x16   : > { %s867_s17 = sshll.u32 %s1442_s21, 3  ;;  %s802_s21 = sshll.u32 %s326_s26, 4  ;;  %s1383_s21 = int_to_ptr.vmem [resolvable:$true] %s802_s21 }
  0x17   : > { %s1279_s24 = scalar_lea.vmem %s1423_s0, %s867_s17  ;;  %533 = vperm.xlu0 %1090, %v529_v7   ;;  %s1092_s16 = scalar_lea.vmem %s1383_s21, 64 }
  0x18   : > { %v333_v8 = vld [vmem:[%s1279_s24] sm:$0xff]  ;;  %v334_v9 = vld [vmem:[%s1279_s24 + $0x8] sm:$0xff]  ;;  %v335_v10 = vld [vmem:[%s1279_s24 + $0x10] sm:$0xff]  ;;  %538 = vperm.xlu1 %1091, %v530_v13   ;;  %p1093_p11 = scmp.ne.s32.totalorder %s1383_s21, %s1092_s16 }
  0x19   : > { %v988_v11 = vpack.c.bf16 %v334_v9, %v333_v8  ;;  %v336_v12 = vld [vmem:[%s1279_s24 + $0x18] sm:$0xff]  ;;  %v337_v17 = vld [vmem:[%s1279_s24 + $0x20] sm:$0xff]  ;;  %v338_v18 = vld [vmem:[%s1279_s24 + $0x28] sm:$0xff] }
  0x1a   : > { %v994_v14 = vpack.c.bf16 %v336_v12, %v335_v10  ;;  %v1000_v19 = vpack.c.bf16 %v338_v18, %v337_v17  ;;  %v339_v20 = vld [vmem:[%s1279_s24 + $0x30] sm:$0xff]  ;;  %v340_v21 = vld [vmem:[%s1279_s24 + $0x38] sm:$0xff]  ;;  %v341_v23 = vld [vmem:[%s1279_s24 + $0x40] sm:$0xff]  ;;  %p1094_p12 = pnand %p1093_p11, %p1249_p5 }
  0x1b   : > { %990 = vmatprep.subr.msk.bf16.mxu0 %vm1283_vm1, %v988_v11  ;;  %629 = vperm.xlu0 %1090, %v626_v15   ;;  %v1006_v22 = vpack.c.bf16 %v340_v21, %v339_v20  ;;  %v342_v24 = vld [vmem:[%s1279_s24 + $0x48] sm:$0xff]  ;;  %v343_v26 = vld [vmem:[%s1279_s24 + $0x50] sm:$0xff]  ;;  %v344_v27 = vld [vmem:[%s1279_s24 + $0x58] sm:$0xff] }
  0x1c   : > { %993 = vmatpush3.bf16.xpose.msk.msra.mxu0 %vm1283_vm1, %v988_v11  ;;  %710 = vperm.xlu1 %1091, %v707_v16   ;;  %v1012_v25 = vpack.c.bf16 %v342_v24, %v341_v23  ;;  %v1018_v28 = vpack.c.bf16 %v344_v27, %v343_v26  ;;  %v345_v29 = vld [vmem:[%s1279_s24 + $0x60] sm:$0xff]  ;;  %v346_v30 = vld [vmem:[%s1279_s24 + $0x68] sm:$0xff]  ;;  %v347_v32 = vld [vmem:[%s1279_s24 + $0x70] sm:$0xff]  ;;  %p1095_p13 = pneg %p1094_p12 }
  0x1d   : > { %996 = vmatprep.subr.msk.bf16.mxu0 %vm1283_vm1, %v994_v14  ;;  %v1024_v31 = vpack.c.bf16 %v346_v30, %v345_v29  ;;  %v348_v33 = vld [vmem:[%s1279_s24 + $0x78] sm:$0xff]  ;;  %v706_v11 = vld [vmem:[%s1430_s7] sm:$0xf]  ;;  %s893_s24 = sshll.u32 %s1232_s13, 6  ;;  %s1160_s13 = smov [#allocation2]  }
  0x1e   : > { %v1030_v34 = vpack.c.bf16 %v348_v33, %v347_v32  ;;  %s1381_s29 = scalar_lea.hbm %s1432_s9, %s893_s24  ;;  %s1096_s17 = sshll.u32 %s1160_s13, 4  ;;  %s1097_s17 = int_to_ptr.vmem [resolvable:$false] %s1096_s17 }
  0x1f   : > { %s1098_s22 = scalar_lea.vmem %s1097_s17, 128  ;;  %p1099_p0 = scmp.lt.s32.totalorder %s1383_s21, %s1097_s17 }
  0x20   : > { %p1100_p1 = scmp.lt.s32.totalorder %s1098_s22, %s1092_s16 }
  0x22   : > { %p1101_p2 = por %p1100_p1, %p1099_p0 }
  0x24   : > { %999 = vmatpush3.bf16.xpose.msk.msra.mxu0 %vm1283_vm1, %v994_v14  ;;  %p1102_p3 = pnand %p1101_p2, %p1095_p13 }
  0x25   : > { %1002 = vmatprep.subr.msk.bf16.mxu0 %vm1283_vm1, %v1000_v19 }
  0x2c   : > { %1005 = vmatpush3.bf16.xpose.msk.msra.mxu0 %vm1283_vm1, %v1000_v19 }
  0x2d   : > { %1008 = vmatprep.subr.msk.bf16.mxu0 %vm1283_vm1, %v1006_v22 }
  0x34   : > { %1011 = vmatpush3.bf16.xpose.msk.msra.mxu0 %vm1283_vm1, %v1006_v22 }
  0x35   : > { %1014 = vmatprep.subr.msk.bf16.mxu0 %vm1283_vm1, %v1012_v25 }
  0x3c   : > { %1017 = vmatpush3.bf16.xpose.msk.msra.mxu0 %vm1283_vm1, %v1012_v25 }
  0x3d   : > { %1020 = vmatprep.subr.msk.bf16.mxu0 %vm1283_vm1, %v1018_v28 }
  0x44   : > { %1023 = vmatpush3.bf16.xpose.msk.msra.mxu0 %vm1283_vm1, %v1018_v28 }
  0x45   : > { %1026 = vmatprep.subr.msk.bf16.mxu0 %vm1283_vm1, %v1024_v31 }
  0x4c   : > { %1029 = vmatpush3.bf16.xpose.msk.msra.mxu0 %vm1283_vm1, %v1024_v31 }
  0x4d   : > { %1032 = vmatprep.subr.msk.bf16.mxu0 %vm1283_vm1, %v1030_v34 }
  0x54   : > { %1035 = vmatpush3.bf16.xpose.msk.msra.mxu0 %vm1283_vm1, %v1030_v34 }
  0x5b   : > { %960 = vmatmul.mubr.msk.f32.vlgmr.msra.gmra.mrb[0].mxu0 %vm377_vm0, %v350_v35 }
  0x5c   : > { %962 = vmatprep.mubr.msk.f32.mxu0 %vm377_vm0, %v351_v36 }
  0x5f   : > { %963 = vmatmul.mubr.msk.f32.gmra.mrb[2].mxu0 %vm377_vm0, %v352_v37 }
  0x8e   : > { %v360_v39 = vpop.permute.xlu0 %359 }
  0x8f   : > { %v370_v40 = vpop.permute.xlu1 %369 }
  0x92   : > { %v365_v41 = vpop.permute.xlu0 %364 }
  0x93   : > { %v375_v47 = vpop.permute.xlu1 %374 }
  0x96   : > { %v534_v62 = vpop.permute.xlu0 %533 }
  0x97   : > { %v539_v60 = vpop.permute.xlu1 %538 }
  0x9a   : > { %v630_v6 = vpop.permute.xlu0 %629 }
  0x9b   : > { %v711_v12 = vpop.permute.xlu1 %710 }
 0x12e   : > { %v961_v42 = vpop.f32.mrb[0].mxu0 }
 0x12f   : > { %v510_v43 = vadd.f32 %v961_v42, %v365_v41  ;;  %v504_v44 = vpop.f32.mrb[1].mxu0 }
 0x130   : > { %v505_v45 = vadd.f32 %v504_v44, %v360_v39 }
 0x131   : > { %v524_v46 = vmax.f32 %v510_v43, 0.0 }
 0x132   : > { %v523_v48 = vmax.f32 %v505_v45, 0.0  ;;  %v964_v49 = vpop.f32.mrb[2].mxu0 }
 0x133   : > { %v520_v50 = vadd.f32 %v964_v49, %v375_v47  ;;  %v514_v51 = vpop.f32.mrb[3].mxu0 }
 0x134   : > { %v515_v52 = vadd.f32 %v514_v51, %v370_v40  ;;  %v1036_v53 = vpack.c.bf16 %v524_v46, %v523_v48 }
 0x135   : > { %v526_v54 = vmax.f32 %v520_v50, 0.0 }
 0x136   : > { %v525_v55 = vmax.f32 %v515_v52, 0.0  ;;  %1037 = vmatprep.subr.bf16.mxu1 %v1036_v53 }
 0x137   : > { %1039 = vmatpush3.bf16.msra.mxu1 %v1036_v53 }
 0x138   : > { %v1040_v56 = vpack.c.bf16 %v526_v54, %v525_v55 }
 0x13a   : > { %1041 = vmatprep.subr.bf16.mxu1 %v1040_v56 }
 0x13b   : > { %1043 = vmatpush3.bf16.msra.mxu1 %v1040_v56 }
 0x13c   : > { %1044 = vmatprep.subr.bf16.mxu1 %v1157_v58 }
 0x13e   : > { %974 = vmatmul.mubr.msk.f32.vlgmr.msra.gmra.mrb[0].mxu1 %vm541_vm2, %v528_v57 }
 0x13f   : > { %980 = vmatprep.mubr.msk.f32.mxu1 %vm1158_vm3, %v1159_v59 }
 0x211   : > { %v975_v61 = vpop.f32.mrb[0].mxu1 }
 0x212   : > { %v620_v63 = vadd.f32 %v975_v61, %v539_v60  ;;  %v614_v0 = vpop.f32.mrb[1].mxu1 }
 0x213   : > { %v615_v1 = vadd.f32 %v614_v0, %v534_v62 }
 0x214   : > { %v624_v2 = vmax.f32 %v620_v63, 0.0 }
 0x215   : > { %v623_v3 = vmax.f32 %v615_v1, 0.0 }
 0x217   : > { %v1045_v4 = vpack.c.bf16 %v624_v2, %v623_v3 }
 0x219   : > { %1046 = vmatpush3.bf16.msra.mxu1 %v1045_v4 }
 0x21a   : > { %983 = vmatprep.subr.mxu1 %v1159_v59 }
 0x21c   : > { %981 = vmatmul.mubr.msk.f32.vlgmr.msra.gmra.mrb[2].mxu1 %vm377_vm0, %v625_v5 }
 0x21d   : > { %985 = vmatprep.mubr.msk.f32.mxu1 %vm1158_vm3, %v1159_v59 }
 0x2ef   : > { %v701_v7 = vpop.f32.mrb[2].mxu1 }
 0x2f0   : > { %v702_v8 = vadd.f32 %v701_v7, %v630_v6  ;;  %v982_v9 = vpop.f32.mrb[3].mxu1 }
 0x2f2   : > { %v705_v10 = vmax.f32 %v702_v8, 0.0 }
 0x2f4   : > { %984 = vmatpush3.msra.mxu1 %v705_v10 }
 0x2f5   : > { %986 = vmatmul.mubr.msk.f32.vlgmr.msra.gmra.mrb[4].mxu1 %vm713_vm4, %v706_v11 }
 0x3c8   : > { %v783_v13 = vpop.f32.mrb[4].mxu1 }
 0x3c9   : > { %v784_v14 = vadd.f32 %v783_v13, %v711_v12  ;;  %v987_v15 = vpop.f32.mrb[5].mxu1 }
 0x3cb   : > { %787 = vst [vmem:[%s326_s26] sm:$0xf] %v784_v14 }
 0x3cc   : > { %1105 = shalt.err (!%p1102_p3)
}
 0x3cd   : > { %s1106_s23 = scalar_lea.hbm %s1381_s29, 64  ;;  %s1110_s26 = scalar_lea.hbm %s1432_s9, 128 }
 0x3ce   : > { %p1107_p4 = scmp.ne.s32.totalorder %s1381_s29, %s1106_s23  ;;  %p1111_p9 = scmp.lt.u32.totalorder %s1381_s29, %s1432_s9 }
 0x3cf   : > { %p1112_p10 = scmp.lt.u32.totalorder %s1110_s26, %s1106_s23  ;;  %p1114_p12 = scmp.lt.u32.totalorder %s1106_s23, %s1381_s29 }
 0x3d0   : > { %p1108_p7 = pnand %p1107_p4, %p1249_p5 }
 0x3d1   : > { %p1113_p11 = por %p1112_p10, %p1111_p9 }
 0x3d2   : > { %p1109_p8 = pneg %p1108_p7 }
 0x3d3   : > { %p1115_p13 = por %p1114_p12, %p1113_p11 }
 0x3d5   : > { %p1116_p0 = pnand %p1115_p13, %p1109_p8 }
 0x3d7   : > { %1119 = shalt.err (!%p1116_p0)
}
 0x3d8   : > { %1047 = dma.vmem_to_hbm [thread:$0]  (%p1249_p5), %s1383_s21, 64, %s1381_s29, %s789_s14  }
 0x3d9 PF: > { %p1053_p1 = scmp.ge.s32.totalorder %s1154_s12, 2  ;;  %s814_s16 = sand.u32 1, %s1142_s30  }
 0x3da   : > { %s815_s13 = scalar_lea.sflag [#allocation3], %s814_s16 }
 0x3db   : > { %p1050_p2 = pnand %p1053_p1, %p1253_p6 }
 0x3dd   : > { %1137 = dma.done.wait (!%p1050_p2), %s815_s13, 64  }
 0x3de   : > { %1139 = vsyncadd (!%p1050_p2), %s815_s13, 4294967232  ;;  %p19_p3 = scmp.ge.s32.totalorder %s1236_s15, 4   ;;  %s1437_s30 = smov %s1146_s10 }
 0x3df   : > { %s1438_s10 = smov %s1150_s11  ;;  %s1439_s11 = smov %s1247_s18 }
 0x3e0   : > { %s1440_s12 = smov %s1236_s15  ;;  %21 = sbr.rel (!%p19_p3) target bundleno = 3 (0x3), region = 91 }
 0x3e7   :  { %820 = vsyncpa [#allocation3], 1 }
 0x3e8   :  { %822 = vsyncpa [#allocation3 + $0x1], 1 }

</bundles_post_ra>
